<compile_context>
chip_gen: v6e
topology: v6e:2x2x1
jax: 0.10.0
libtpu: 0.0.40
codegen_flags: <defaults>
</compile_context>

<pallas_src>
import jax
import jax.numpy as jnp
from jax.experimental import pallas as pl
from jax.experimental.pallas import tpu as pltpu


_MAX_TM = 1024        # rows per grid step (upper bound)
_MIN_GRID_STEPS = 4   # keep >=4 row-grid steps when n is large (v7x megacore)


def _round_up(x: int, m: int) -> int:
    return (x + m - 1) // m * m


def _choose_tm(n: int) -> int:
    """Row tile: multiple of 8, <= _MAX_TM, and >= ~_MIN_GRID_STEPS grid steps."""
    tm = _round_up(max(pl.cdiv(n, _MIN_GRID_STEPS), 1), 8)
    return max(8, min(_MAX_TM, tm))


def _mlp_kernel(x_ref, w1_ref, b1_ref, w2_ref, b2_ref, o_ref):
    # hidden = tanh(x @ W1 + b1)   -- MXU matmul (f32 accumulate), EUP tanh
    h = jnp.tanh(
        jnp.dot(x_ref[...], w1_ref[...], preferred_element_type=jnp.float32)
        + b1_ref[...]
    )
    # out = hidden @ W2 + b2       -- (TM, out_dim) store (out_dim = full dim)
    out = (
        jnp.dot(h.astype(w2_ref.dtype), w2_ref[...],
                preferred_element_type=jnp.float32)
        + b2_ref[...]
    )
    o_ref[...] = out.astype(o_ref.dtype)


def _mlp_2d(x2d, w1, b1, w2, b2):
    """x2d: (N, in_dim). Returns (N, out_dim) = linear2(tanh(linear1(x2d)))."""
    n, in_dim = x2d.shape
    hid = w1.shape[1]
    out_dim = w2.shape[1]

    tm = _choose_tm(n)
    grid = (pl.cdiv(n, tm),)

    itemsize = jnp.dtype(x2d.dtype).itemsize
    w_bytes = (w1.size + b1.size + w2.size + b2.size) * jnp.dtype(w1.dtype).itemsize
    cost = pl.CostEstimate(
        flops=2 * n * (in_dim * hid + hid * out_dim),
        transcendentals=n * hid,
        bytes_accessed=int((n * in_dim + n * out_dim) * itemsize + w_bytes),
    )

    return pl.pallas_call(
        _mlp_kernel,
        out_shape=jax.ShapeDtypeStruct((n, out_dim), x2d.dtype),
        grid_spec=pltpu.PrefetchScalarGridSpec(
            num_scalar_prefetch=0,
            grid=grid,
            in_specs=[
                # x: row-tiled, auto double-buffered (ragged last block OK).
                pl.BlockSpec((tm, in_dim), lambda i: (i, 0)),
                # Weights/biases: full-array blocks, VMEM-resident across grid.
                pl.BlockSpec((in_dim, hid), lambda i: (0, 0)),
                pl.BlockSpec((1, hid), lambda i: (0, 0)),
                pl.BlockSpec((hid, out_dim), lambda i: (0, 0)),
                pl.BlockSpec((1, out_dim), lambda i: (0, 0)),
            ],
            out_specs=pl.BlockSpec((tm, out_dim), lambda i: (i, 0)),
        ),
        compiler_params=pltpu.CompilerParams(
            dimension_semantics=("parallel",),
        ),
        cost_estimate=cost,
    )(x2d, w1, b1, w2, b2)


def discriminator_forward(hist_news_vector, cand_news_vector, params):
    """Applies linear2(tanh(linear1(.))) to both inputs, like the nn.Module."""
    w1, b1, w2, b2 = params["w1"], params["b1"], params["w2"], params["b2"]
    in_dim = w1.shape[0]
    out_dim = w2.shape[1]

    hist2d = hist_news_vector.reshape(-1, in_dim)
    cand2d = cand_news_vector.reshape(-1, in_dim)

    pred_hist = _mlp_2d(hist2d, w1, b1, w2, b2).reshape(
        *hist_news_vector.shape[:-1], out_dim)
    pred_cand = _mlp_2d(cand2d, w1, b1, w2, b2).reshape(
        *cand_news_vector.shape[:-1], out_dim)
    return pred_hist, pred_cand


def init_params(key, input_dim, hidden_dim, output_dim, dtype=jnp.float32):
    k1, k2, k3, k4 = jax.random.split(key, 4)
    # Matches nn.Linear shapes, pre-transposed to (in_features, out_features)
    # so the kernel computes x @ W + b.
    s1 = 1.0 / jnp.sqrt(input_dim)
    s2 = 1.0 / jnp.sqrt(hidden_dim)
    return {
        "w1": jax.random.uniform(k1, (input_dim, hidden_dim), dtype, -s1, s1),
        "b1": jax.random.uniform(k2, (1, hidden_dim), dtype, -s1, s1),
        "w2": jax.random.uniform(k3, (hidden_dim, output_dim), dtype, -s2, s2),
        "b2": jax.random.uniform(k4, (1, output_dim), dtype, -s2, s2),
    }


def _reference(hist, cand, p):
    hp = jax.lax.Precision.HIGHEST

    def f(x):
        h = jnp.tanh(jnp.dot(x, p["w1"], precision=hp) + p["b1"][0])
        return jnp.dot(h, p["w2"], precision=hp) + p["b2"][0]

    return f(hist), f(cand)


if __name__ == "__main__":
    input_dim, hidden_dim, output_dim = 32, 16, 3
    batch, hist_len, cand_len = 2, 8, 4

    key = jax.random.PRNGKey(0)
    kp, kh, kc = jax.random.split(key, 3)
    params = init_params(kp, input_dim, hidden_dim, output_dim)

    hist_news_vector = jax.random.normal(kh, (batch, hist_len, input_dim), jnp.float32)
    cand_news_vector = jax.random.normal(kc, (batch, cand_len, input_dim), jnp.float32)

    fwd = jax.jit(discriminator_forward)
    pred_hist, pred_cand = fwd(hist_news_vector, cand_news_vector, params)
    jax.block_until_ready((pred_hist, pred_cand))

    ref_hist, ref_cand = _reference(hist_news_vector, cand_news_vector, params)
    assert pred_hist.shape == (batch, hist_len, output_dim)
    assert pred_cand.shape == (batch, cand_len, output_dim)
    assert jnp.allclose(pred_hist, ref_hist, atol=1e-3, rtol=1e-3)
    assert jnp.allclose(pred_cand, ref_cand, atol=1e-3, rtol=1e-3)

    print("KERNEL_OK")
</pallas_src>

<mosaic_0001>
module attributes {stable_mosaic.version = 11 : i64} {
  func.func @_mlp_kernel(%arg0: i32, %arg1: memref<8x32xf32, #tpu.memory_space<vmem>>, %arg2: memref<32x16xf32, #tpu.memory_space<vmem>>, %arg3: memref<1x16xf32, #tpu.memory_space<vmem>>, %arg4: memref<16x3xf32, #tpu.memory_space<vmem>>, %arg5: memref<1x3xf32, #tpu.memory_space<vmem>>, %arg6: memref<8x3xf32, #tpu.memory_space<vmem>>) attributes {dimension_semantics = [#tpu.dimension_semantics<parallel>], iteration_bounds = array<i64: 2>, scalar_prefetch = 0 : i64, scratch_operands = 0 : i64, tpu.core_type = #tpu.core_type<tc>, window_params = [{transform_indices = @transform_0, window_bounds = array<i64: 8, 32>}, {pipeline_mode = #tpu.pipeline_mode<synchronous>, transform_indices = @transform_1, window_bounds = array<i64: 32, 16>}, {pipeline_mode = #tpu.pipeline_mode<synchronous>, transform_indices = @transform_2, window_bounds = array<i64: 1, 16>}, {pipeline_mode = #tpu.pipeline_mode<synchronous>, transform_indices = @transform_3, window_bounds = array<i64: 16, 3>}, {pipeline_mode = #tpu.pipeline_mode<synchronous>, transform_indices = @transform_4, window_bounds = array<i64: 1, 3>}, {transform_indices = @transform_5, window_bounds = array<i64: 8, 3>}]} {
    %c0 = arith.constant 0 : index
    %c0_0 = arith.constant 0 : index
    %0 = vector.load %arg1[%c0, %c0_0] : memref<8x32xf32, #tpu.memory_space<vmem>>, vector<8x32xf32>
    %c0_1 = arith.constant 0 : index
    %c0_2 = arith.constant 0 : index
    %1 = vector.load %arg2[%c0_1, %c0_2] : memref<32x16xf32, #tpu.memory_space<vmem>>, vector<32x16xf32>
    %cst = arith.constant dense<0.000000e+00> : vector<8x16xf32>
    %2 = tpu.matmul %0, %1, %cst {dimension_numbers = #tpu.dot_dimension_numbers<[1], [0], [0], [1], [0, 0, 1, 1], [], []>} : vector<8x32xf32>, vector<32x16xf32>, vector<8x16xf32> -> vector<8x16xf32>
    %c0_3 = arith.constant 0 : index
    %c0_4 = arith.constant 0 : index
    %3 = vector.load %arg3[%c0_3, %c0_4] : memref<1x16xf32, #tpu.memory_space<vmem>>, vector<1x16xf32>
    %4 = vector.broadcast %3 : vector<1x16xf32> to vector<8x16xf32>
    %5 = arith.addf %2, %4 : vector<8x16xf32>
    %6 = math.tanh %5 : vector<8x16xf32>
    %c0_5 = arith.constant 0 : index
    %c0_6 = arith.constant 0 : index
    %7 = vector.load %arg4[%c0_5, %c0_6] : memref<16x3xf32, #tpu.memory_space<vmem>>, vector<16x3xf32>
    %cst_7 = arith.constant dense<0.000000e+00> : vector<8x3xf32>
    %8 = tpu.matmul %6, %7, %cst_7 {dimension_numbers = #tpu.dot_dimension_numbers<[1], [0], [0], [1], [0, 0, 1, 1], [], []>} : vector<8x16xf32>, vector<16x3xf32>, vector<8x3xf32> -> vector<8x3xf32>
    %c0_8 = arith.constant 0 : index
    %c0_9 = arith.constant 0 : index
    %9 = vector.load %arg5[%c0_8, %c0_9] : memref<1x3xf32, #tpu.memory_space<vmem>>, vector<1x3xf32>
    %10 = vector.broadcast %9 : vector<1x3xf32> to vector<8x3xf32>
    %11 = arith.addf %8, %10 : vector<8x3xf32>
    %c0_10 = arith.constant 0 : index
    %c0_11 = arith.constant 0 : index
    %12 = vector.load %arg6[%c0_10, %c0_11] : memref<8x3xf32, #tpu.memory_space<vmem>>, vector<8x3xf32>
    tpu.vector_store %arg6[%c0_10, %c0_11], %11 {strides = array<i32>} : memref<8x3xf32, #tpu.memory_space<vmem>>, vector<8x3xf32>,
    return
  }
  func.func @transform_0(%arg0: i32) -> (i32, i32) {
    %c0_i32 = arith.constant 0 : i32
    %c0_i32_0 = arith.constant 0 : i32
    return %arg0, %c0_i32 : i32, i32
  }
  func.func @transform_1(%arg0: i32) -> (i32, i32) {
    %c0_i32 = arith.constant 0 : i32
    %c0_i32_0 = arith.constant 0 : i32
    %c0_i32_1 = arith.constant 0 : i32
    return %c0_i32, %c0_i32_0 : i32, i32
  }
  func.func @transform_2(%arg0: i32) -> (i32, i32) {
    %c0_i32 = arith.constant 0 : i32
    %c0_i32_0 = arith.constant 0 : i32
    %c0_i32_1 = arith.constant 0 : i32
    return %c0_i32, %c0_i32_0 : i32, i32
  }
  func.func @transform_3(%arg0: i32) -> (i32, i32) {
    %c0_i32 = arith.constant 0 : i32
    %c0_i32_0 = arith.constant 0 : i32
    %c0_i32_1 = arith.constant 0 : i32
    return %c0_i32, %c0_i32_0 : i32, i32
  }
  func.func @transform_4(%arg0: i32) -> (i32, i32) {
    %c0_i32 = arith.constant 0 : i32
    %c0_i32_0 = arith.constant 0 : i32
    %c0_i32_1 = arith.constant 0 : i32
    return %c0_i32, %c0_i32_0 : i32, i32
  }
  func.func @transform_5(%arg0: i32) -> (i32, i32) {
    %c0_i32 = arith.constant 0 : i32
    %c0_i32_0 = arith.constant 0 : i32
    return %arg0, %c0_i32 : i32, i32
  }
}

module attributes {stable_mosaic.version = 11 : i64} {
  func.func @_mlp_kernel(%arg0: i32, %arg1: memref<8x32xf32, #tpu.memory_space<vmem>>, %arg2: memref<32x16xf32, #tpu.memory_space<vmem>>, %arg3: memref<1x16xf32, #tpu.memory_space<vmem>>, %arg4: memref<16x3xf32, #tpu.memory_space<vmem>>, %arg5: memref<1x3xf32, #tpu.memory_space<vmem>>, %arg6: memref<8x3xf32, #tpu.memory_space<vmem>>) attributes {dimension_semantics = [#tpu.dimension_semantics<parallel>], iteration_bounds = array<i64: 1>, scalar_prefetch = 0 : i64, scratch_operands = 0 : i64, tpu.core_type = #tpu.core_type<tc>, window_params = [{transform_indices = @transform_0, window_bounds = array<i64: 8, 32>}, {pipeline_mode = #tpu.pipeline_mode<synchronous>, transform_indices = @transform_1, window_bounds = array<i64: 32, 16>}, {pipeline_mode = #tpu.pipeline_mode<synchronous>, transform_indices = @transform_2, window_bounds = array<i64: 1, 16>}, {pipeline_mode = #tpu.pipeline_mode<synchronous>, transform_indices = @transform_3, window_bounds = array<i64: 16, 3>}, {pipeline_mode = #tpu.pipeline_mode<synchronous>, transform_indices = @transform_4, window_bounds = array<i64: 1, 3>}, {transform_indices = @transform_5, window_bounds = array<i64: 8, 3>}]} {
    %c0 = arith.constant 0 : index
    %c0_0 = arith.constant 0 : index
    %0 = vector.load %arg1[%c0, %c0_0] : memref<8x32xf32, #tpu.memory_space<vmem>>, vector<8x32xf32>
    %c0_1 = arith.constant 0 : index
    %c0_2 = arith.constant 0 : index
    %1 = vector.load %arg2[%c0_1, %c0_2] : memref<32x16xf32, #tpu.memory_space<vmem>>, vector<32x16xf32>
    %cst = arith.constant dense<0.000000e+00> : vector<8x16xf32>
    %2 = tpu.matmul %0, %1, %cst {dimension_numbers = #tpu.dot_dimension_numbers<[1], [0], [0], [1], [0, 0, 1, 1], [], []>} : vector<8x32xf32>, vector<32x16xf32>, vector<8x16xf32> -> vector<8x16xf32>
    %c0_3 = arith.constant 0 : index
    %c0_4 = arith.constant 0 : index
    %3 = vector.load %arg3[%c0_3, %c0_4] : memref<1x16xf32, #tpu.memory_space<vmem>>, vector<1x16xf32>
    %4 = vector.broadcast %3 : vector<1x16xf32> to vector<8x16xf32>
    %5 = arith.addf %2, %4 : vector<8x16xf32>
    %6 = math.tanh %5 : vector<8x16xf32>
    %c0_5 = arith.constant 0 : index
    %c0_6 = arith.constant 0 : index
    %7 = vector.load %arg4[%c0_5, %c0_6] : memref<16x3xf32, #tpu.memory_space<vmem>>, vector<16x3xf32>
    %cst_7 = arith.constant dense<0.000000e+00> : vector<8x3xf32>
    %8 = tpu.matmul %6, %7, %cst_7 {dimension_numbers = #tpu.dot_dimension_numbers<[1], [0], [0], [1], [0, 0, 1, 1], [], []>} : vector<8x16xf32>, vector<16x3xf32>, vector<8x3xf32> -> vector<8x3xf32>
    %c0_8 = arith.constant 0 : index
    %c0_9 = arith.constant 0 : index
    %9 = vector.load %arg5[%c0_8, %c0_9] : memref<1x3xf32, #tpu.memory_space<vmem>>, vector<1x3xf32>
    %10 = vector.broadcast %9 : vector<1x3xf32> to vector<8x3xf32>
    %11 = arith.addf %8, %10 : vector<8x3xf32>
    %c0_10 = arith.constant 0 : index
    %c0_11 = arith.constant 0 : index
    %12 = vector.load %arg6[%c0_10, %c0_11] : memref<8x3xf32, #tpu.memory_space<vmem>>, vector<8x3xf32>
    tpu.vector_store %arg6[%c0_10, %c0_11], %11 {strides = array<i32>} : memref<8x3xf32, #tpu.memory_space<vmem>>, vector<8x3xf32>,
    return
  }
  func.func @transform_0(%arg0: i32) -> (i32, i32) {
    %c0_i32 = arith.constant 0 : i32
    %c0_i32_0 = arith.constant 0 : i32
    return %arg0, %c0_i32 : i32, i32
  }
  func.func @transform_1(%arg0: i32) -> (i32, i32) {
    %c0_i32 = arith.constant 0 : i32
    %c0_i32_0 = arith.constant 0 : i32
    %c0_i32_1 = arith.constant 0 : i32
    return %c0_i32, %c0_i32_0 : i32, i32
  }
  func.func @transform_2(%arg0: i32) -> (i32, i32) {
    %c0_i32 = arith.constant 0 : i32
    %c0_i32_0 = arith.constant 0 : i32
    %c0_i32_1 = arith.constant 0 : i32
    return %c0_i32, %c0_i32_0 : i32, i32
  }
  func.func @transform_3(%arg0: i32) -> (i32, i32) {
    %c0_i32 = arith.constant 0 : i32
    %c0_i32_0 = arith.constant 0 : i32
    %c0_i32_1 = arith.constant 0 : i32
    return %c0_i32, %c0_i32_0 : i32, i32
  }
  func.func @transform_4(%arg0: i32) -> (i32, i32) {
    %c0_i32 = arith.constant 0 : i32
    %c0_i32_0 = arith.constant 0 : i32
    %c0_i32_1 = arith.constant 0 : i32
    return %c0_i32, %c0_i32_0 : i32, i32
  }
  func.func @transform_5(%arg0: i32) -> (i32, i32) {
    %c0_i32 = arith.constant 0 : i32
    %c0_i32_0 = arith.constant 0 : i32
    return %arg0, %c0_i32 : i32, i32
  }
}

</mosaic_0001>

<bundles_post_ra>
// kernel: discriminator_forward.2
= control target key start
LH: loop header
LB: loop body
LE: loop exit
PB: predicated region body
PF: predicated region fallthrough
CT: control target
= control target key end

     0   :  { %s536_s18 = smov 0   ;;  %s580_s0 = inlined_call_operand.vmem [shape: f32[16,32], index: 0, kind: input, shape index: {}]   ;;  %s581_s1 = inlined_call_operand.vmem [shape: f32[32,16], index: 1, kind: input, shape index: {}]   ;;  %s582_s2 = inlined_call_operand.vmem [shape: f32[1,16], index: 2, kind: input, shape index: {}]   ;;  %s583_s3 = inlined_call_operand.vmem [shape: f32[16,3], index: 3, kind: input, shape index: {}]   ;;  %s584_s4 = inlined_call_operand.vmem [shape: f32[1,3], index: 4, kind: input, shape index: {}]   ;;  %s585_s5 = inlined_call_operand.vmem [shape: f32[16,3], index: 5, kind: output, shape index: {}]  }
   0x1 LB: > { %s445_s19 = sadd.s32 4294967295, %s502_s18   ;;  %p449_p0 = scmp.ge.s32.totalorder %s502_s18, 1  ;;  %s502_s18 = sphi %s536_s18, %s15_s18  }
   0x2   : > { %p186_p1 = scmp.lt.s32.totalorder %s502_s18, 3 }
   0x4   : > { %p187_p2 = pnand %p449_p0, %p186_p1 }
   0x5   : > { %p212_p3 = scmp.lt.s32.totalorder (!%p187_p2), %s445_s19, 1 }
   0x6   : > { %190 = sbr.rel (%p187_p2) target bundleno = 425 (0x1a9), region = 40 }
   0xb   : > { %v224_v0 = vld [vmem:[%s581_s1 + $0x18] sm:$0xff]  ;;  %v504_v1 = vmov 0.0   ;;  %v223_v2 = vld [vmem:[%s581_s1 + $0x10] sm:$0xff]  ;;  %vm505_vm0 = vmmov 0   ;;  %s587_s19 = smov (!%p212_p3, %s445_s19), 1  ;;  %v222_v3 = vld [vmem:[%s581_s1 + $0x8] sm:$0xff] }
   0xc   : > { %466 = vmatprep.subr.mxu0 %v504_v1  ;;  %474 = vmatprep.mubr.msk.f32.mxu0 %vm505_vm0, %v504_v1  ;;  %s450_s26 = sshll.u32 %s587_s19, 3  ;;  %v221_v4 = vld [vmem:[%s581_s1] sm:$0xff]  ;;  %vm232_vm1 = vcmask 261120   ;;  %v308_v6 = vld [vmem:[%s583_s3 + $0x8] sm:$0xff]  ;;  %vm316_vm2 = vcmask 130048   ;;  %vm390_vm3 = vcmask 23552  }
   0xd   : > { %467 = vmatpush3.msra.mxu0 %v224_v0  ;;  %477 = vmatprep.subr.mxu1 %v504_v1  ;;  %s215_s6 = scalar_lea.vmem %s580_s0, %s450_s26  ;;  %v307_v7 = vld [vmem:[%s583_s3] sm:$0xff]  ;;  %s219_s17 = scalar_lea.vmem %s585_s5, %s450_s26 }
   0xe   : > { %468 = vmatprep.subr.mxu0 %v504_v1  ;;  %481 = vmatprep.mubr.msk.f32.mxu1 %vm505_vm0, %v504_v1  ;;  %v220_v5 = vld [vmem:[%s215_s6] sm:$0xff] }
   0xf   : > { %469 = vmatpush3.msra.mxu0 %v223_v2  ;;  %478 = vmatpush3.msra.mxu1 %v308_v6  ;;  %v452_v8 = vld [vmem:[%s582_s2] ss:$0 sm:$0xff] }
  0x10   : > { %470 = vmatprep.subr.mxu0 %v504_v1  ;;  %479 = vmatprep.subr.mxu1 %v504_v1  ;;  %v454_v13 = vld [vmem:[%s584_s4] ss:$0 sm:$0xff] }
  0x11   : > { %471 = vmatpush3.msra.mxu0 %v222_v3  ;;  %480 = vmatpush3.msra.mxu1 %v307_v7 }
  0x12   : > { %472 = vmatprep.subr.mxu0 %v504_v1 }
  0x13   : > { %473 = vmatpush3.msra.mxu0 %v221_v4 }
  0x14   : > { %475 = vmatmul.mubr.msk.f32.vlgmr.msra.gmra.mxu0 %vm232_vm1, %v220_v5 }
  0xd4   : > { %v302_v9 = vpop.f32.mrf.mxu0 }
  0xd5   : > { %v303_v10 = vadd.f32 %v452_v8, %v302_v9 }
  0xd6   : > { %v476_v11 = vpop.f32.mrf.mxu0 }
  0xd7   : > { %494 = vtanh.f32 %v303_v10 }
  0xe4   : > { %v495_v12 = vpop.eup %494 }
  0xe5   : > { %482 = vmatmul.mubr.msk.f32.vlgmr.msra.gmra.mxu1 %vm316_vm2, %v495_v12 }
 0x1a5   : > { %v386_v14 = vpop.f32.mrf.mxu1 }
 0x1a6   : > { %v387_v15 = vadd.f32 %v454_v13, %v386_v14 }
 0x1a7   : > { %v483_v16 = vpop.f32.mrf.mxu1 }
 0x1a8   : > { %391 = vst.msk [vmem:[%s219_s17] sm:$0xff] %vm390_vm3, %v387_v15 }
 0x1a9 PF: > { %s15_s18 = sadd.s32 1, %s502_s18  }
 0x1aa   : > { %p12_p4 = scmp.ge.s32.totalorder %s15_s18, 4  }
 0x1ac   :  { %14 = sbr.rel (!%p12_p4) target bundleno = 1 (0x1), region = 70 }

// kernel: discriminator_forward.3
= control target key start
LH: loop header
LB: loop body
LE: loop exit
PB: predicated region body
PF: predicated region fallthrough
CT: control target
= control target key end

     0   :  { %v230_v0 = vmov 0.0   ;;  %vm231_vm0 = vmmov 0   ;;  %vm32_vm1 = vcmask 261120   ;;  %vm116_vm2 = vcmask 130048   ;;  %s292_s1 = inlined_call_operand.vmem [shape: f32[32,16], index: 1, kind: input, shape index: {}]   ;;  %s293_s0 = inlined_call_operand.vmem [shape: f32[8,32], index: 0, kind: input, shape index: {}]   ;;  %s294_s3 = inlined_call_operand.vmem [shape: f32[16,3], index: 3, kind: input, shape index: {}]   ;;  %s295_s2 = inlined_call_operand.vmem [shape: f32[1,16], index: 2, kind: input, shape index: {}]   ;;  %s296_s4 = inlined_call_operand.vmem [shape: f32[1,3], index: 4, kind: input, shape index: {}]   ;;  %s297_s5 = inlined_call_operand.vmem [shape: f32[8,3], index: 5, kind: output, shape index: {}]  }
   0x1   :  { %208 = vmatprep.subr.mxu0 %v230_v0  ;;  %v24_v1 = vld [vmem:[%s292_s1 + $0x18] sm:$0xff]  ;;  %v23_v2 = vld [vmem:[%s292_s1 + $0x10] sm:$0xff]  ;;  %216 = vmatprep.mubr.msk.f32.mxu0 %vm231_vm0, %v230_v0  ;;  %v22_v3 = vld [vmem:[%s292_s1 + $0x8] sm:$0xff]  ;;  %vm190_vm3 = vcmask 23552  }
   0x2   :  { %209 = vmatpush3.msra.mxu0 %v24_v1  ;;  %219 = vmatprep.subr.mxu1 %v230_v0  ;;  %v21_v4 = vld [vmem:[%s292_s1] sm:$0xff]  ;;  %v108_v6 = vld [vmem:[%s294_s3 + $0x8] sm:$0xff] }
   0x3   :  { %210 = vmatprep.subr.mxu0 %v230_v0  ;;  %223 = vmatprep.mubr.msk.f32.mxu1 %vm231_vm0, %v230_v0  ;;  %v20_v5 = vld [vmem:[%s293_s0] sm:$0xff] }
   0x4   :  { %211 = vmatpush3.msra.mxu0 %v23_v2  ;;  %v107_v7 = vld [vmem:[%s294_s3] sm:$0xff]  ;;  %220 = vmatpush3.msra.mxu1 %v108_v6 }
   0x5   :  { %212 = vmatprep.subr.mxu0 %v230_v0  ;;  %221 = vmatprep.subr.mxu1 %v230_v0  ;;  %v196_v8 = vld [vmem:[%s295_s2] ss:$0 sm:$0xff] }
   0x6   :  { %213 = vmatpush3.msra.mxu0 %v22_v3  ;;  %222 = vmatpush3.msra.mxu1 %v107_v7  ;;  %v198_v13 = vld [vmem:[%s296_s4] ss:$0 sm:$0xff] }
   0x7   :  { %214 = vmatprep.subr.mxu0 %v230_v0 }
   0x8   :  { %215 = vmatpush3.msra.mxu0 %v21_v4 }
   0x9   :  { %217 = vmatmul.mubr.msk.f32.vlgmr.msra.gmra.mxu0 %vm32_vm1, %v20_v5 }
  0xc9   :  { %v102_v9 = vpop.f32.mrf.mxu0 }
  0xca   :  { %v103_v10 = vadd.f32 %v196_v8, %v102_v9 }
  0xcb   :  { %v218_v11 = vpop.f32.mrf.mxu0 }
  0xcc   :  { %228 = vtanh.f32 %v103_v10 }
  0xd9   :  { %v229_v12 = vpop.eup %228 }
  0xda   :  { %224 = vmatmul.mubr.msk.f32.vlgmr.msra.gmra.mxu1 %vm116_vm2, %v229_v12 }
 0x19a   :  { %v186_v14 = vpop.f32.mrf.mxu1 }
 0x19b   :  { %v187_v15 = vadd.f32 %v198_v13, %v186_v14 }
 0x19c   :  { %v225_v16 = vpop.f32.mrf.mxu1 }
 0x19d   :  { %191 = vst.msk [vmem:[%s297_s5] sm:$0xff] %vm190_vm3, %v187_v15 }

</bundles_post_ra>
